<compile_context>
chip_gen: v7x
topology: tpu7x:2x2x1
jax: 0.10.0
libtpu: 0.0.40
codegen_flags: <defaults>
</compile_context>

<pallas_src>
import functools

import jax
import jax.numpy as jnp
from jax.experimental import pallas as pl
from jax.experimental.pallas import tpu as pltpu


def _label_smoothing_kernel(target_ref, pred_ref, out_ref, *, confidence,
                            smoothing, n_total):
    i = pl.program_id(0)

    x = pred_ref[...].astype(jnp.float32)            # (tb, C), f32 compute
    tb, c = x.shape

    # log_softmax pieces (never materialize full logp).
    m = jnp.max(x, axis=-1, keepdims=True)           # (tb, 1)
    z = x - m                                        # (tb, C)
    lse = jnp.log(jnp.sum(jnp.exp(z), axis=-1, keepdims=True))   # (tb, 1)
    sum_z = jnp.sum(z, axis=-1, keepdims=True)       # (tb, 1)

    # z at the target class: masked lane-reduce (no one_hot * confidence pass).
    tgt = target_ref[...]                            # (tb, 1) int32
    col = jax.lax.broadcasted_iota(jnp.int32, x.shape, 1)
    z_tgt = jnp.sum(jnp.where(col == tgt, z, 0.0), axis=-1, keepdims=True)

    # row_loss = -(confidence*logp[tgt] + (s/C)*sum_c logp)
    #          =  confidence*(lse - z_tgt) + (s/C)*(C*lse - sum_z)
    row_loss = (confidence * (lse - z_tgt)
                + (smoothing / c) * (jnp.float32(c) * lse - sum_z))  # (tb, 1)

    # Mask rows of the (possibly ragged) last tile.
    row_id = i * tb + jax.lax.broadcasted_iota(jnp.int32, (tb, 1), 0)
    row_loss = jnp.where(row_id < n_total, row_loss, 0.0)

    partial = jnp.sum(row_loss)                      # scalar f32 for this tile
    # Lane/sublane-aligned (8,128) output block -> unmasked vector store.
    out_ref[...] = jnp.full(out_ref.shape, partial, dtype=out_ref.dtype)


def label_smoothing_loss(pred, target, *, smoothing=0.1, tb=None,
                         vmem_budget_bytes=16 * 1024 * 1024):
    """pred: (N, C) float (f32 or bf16), target: (N,) int -> scalar f32 loss."""
    n, c = pred.shape
    confidence = 1.0 - smoothing
    target2d = target.reshape(n, 1).astype(jnp.int32)

    if tb is None:
        # Per-row VMEM bytes per buffer: pred row + lane-padded (tb,1) target.
        pred_row_bytes = c * jnp.dtype(pred.dtype).itemsize
        tgt_row_bytes = 128 * 4
        bytes_per_row = pred_row_bytes + tgt_row_bytes
        # Two double-buffered copies must fit the budget (safe on v7x 64 MiB).
        tb = (vmem_budget_bytes // (2 * bytes_per_row)) // 8 * 8
        tb = int(max(8, min(tb, 2048)))
    # Keep sublane alignment and never exceed the padded batch length.
    tb = int(max(8, min(tb, ((n + 7) // 8) * 8)))
    tb = ((tb + 7) // 8) * 8

    num_tiles = (n + tb - 1) // tb

    kernel = functools.partial(
        _label_smoothing_kernel,
        confidence=confidence,
        smoothing=smoothing,
        n_total=n,
    )

    partials = pl.pallas_call(
        kernel,
        out_shape=jax.ShapeDtypeStruct((num_tiles, 8, 128), jnp.float32),
        grid_spec=pltpu.PrefetchScalarGridSpec(
            num_scalar_prefetch=0,
            grid=(num_tiles,),
            in_specs=[
                pl.BlockSpec((tb, 1), lambda i: (i, 0)),   # target tile
                pl.BlockSpec((tb, c), lambda i: (i, 0)),   # pred tile
            ],
            out_specs=pl.BlockSpec((1, 8, 128), lambda i: (i, 0, 0)),
        ),
        compiler_params=pltpu.CompilerParams(
            dimension_semantics=("parallel",),          # independent tiles
            vmem_limit_bytes=32 * 1024 * 1024,          # safe on v5e/v6e/v7x
        ),
    )(target2d, pred)

    # Final reduction + mean in plain JAX (f32, tiny).
    return jnp.sum(partials[:, 0, 0]) / jnp.float32(n)


def _reference(pred, target, smoothing):
    confidence = 1.0 - smoothing
    c = pred.shape[-1]
    logp = jax.nn.log_softmax(pred.astype(jnp.float32), axis=-1)
    true_dist = (jax.nn.one_hot(target, c, dtype=jnp.float32) * confidence
                 + smoothing / c)
    return jnp.mean(jnp.sum(-true_dist * logp, axis=-1))


if __name__ == "__main__":
    key = jax.random.PRNGKey(0)
    k1, k2, k3, k4 = jax.random.split(key, 4)
    smoothing = 0.1

    # Case 1: small, lane-friendly shapes.
    N, C = 16, 128
    pred = jax.random.normal(k1, (N, C), dtype=jnp.float32)
    target = jax.random.randint(k2, (N,), 0, C, dtype=jnp.int32)
    loss = jax.block_until_ready(label_smoothing_loss(pred, target,
                                                      smoothing=smoothing))
    ref = _reference(pred, target, smoothing)
    assert jnp.allclose(loss, ref, atol=1e-5, rtol=1e-5), (loss, ref)

    # Case 2: ragged batch + multiple tiles (exercises the mask + parallel
    # per-tile partials).
    N2, C2 = 50, 128
    pred2 = jax.random.normal(k3, (N2, C2), dtype=jnp.float32)
    target2 = jax.random.randint(k4, (N2,), 0, C2, dtype=jnp.int32)
    loss2 = jax.block_until_ready(label_smoothing_loss(pred2, target2,
                                                       smoothing=smoothing,
                                                       tb=16))
    ref2 = _reference(pred2, target2, smoothing)
    assert jnp.allclose(loss2, ref2, atol=1e-5, rtol=1e-5), (loss2, ref2)

    print("KERNEL_OK")
</pallas_src>

<mosaic_0001>
module attributes {stable_mosaic.version = 11 : i64} {
  func.func @_label_smoothing_kernel(%arg0: i32, %arg1: memref<16x1xi32, #tpu.memory_space<vmem>>, %arg2: memref<16x128xf32, #tpu.memory_space<vmem>>, %arg3: memref<1x8x128xf32, #tpu.memory_space<vmem>>) attributes {dimension_semantics = [#tpu.dimension_semantics<parallel>], iteration_bounds = array<i64: 1>, scalar_prefetch = 0 : i64, scratch_operands = 0 : i64, tpu.core_type = #tpu.core_type<tc>, window_params = [{transform_indices = @transform_0, window_bounds = array<i64: 16, 1>}, {transform_indices = @transform_1, window_bounds = array<i64: 16, 128>}, {transform_indices = @transform_2, window_bounds = array<i64: 1, 8, 128>}]} {
    %c0 = arith.constant 0 : index
    %c0_0 = arith.constant 0 : index
    %0 = vector.load %arg2[%c0, %c0_0] : memref<16x128xf32, #tpu.memory_space<vmem>>, vector<16x128xf32>
    %cst = arith.constant dense<0xFF800000> : vector<16xf32>
    %1 = vector.multi_reduction <maximumf>, %0, %cst [1] : vector<16x128xf32> to vector<16xf32>
    %2 = vector.shape_cast %1 : vector<16xf32> to vector<16x1xf32>
    %3 = vector.broadcast %2 : vector<16x1xf32> to vector<16x128xf32>
    %4 = arith.subf %0, %3 : vector<16x128xf32>
    %5 = math.exp %4 : vector<16x128xf32>
    %cst_1 = arith.constant dense<0.000000e+00> : vector<16xf32>
    %6 = vector.multi_reduction <add>, %5, %cst_1 [1] : vector<16x128xf32> to vector<16xf32>
    %7 = vector.shape_cast %6 : vector<16xf32> to vector<16x1xf32>
    %8 = math.log %7 : vector<16x1xf32>
    %cst_2 = arith.constant dense<0.000000e+00> : vector<16xf32>
    %9 = vector.multi_reduction <add>, %4, %cst_2 [1] : vector<16x128xf32> to vector<16xf32>
    %10 = vector.shape_cast %9 : vector<16xf32> to vector<16x1xf32>
    %c0_3 = arith.constant 0 : index
    %c0_4 = arith.constant 0 : index
    %11 = vector.load %arg1[%c0_3, %c0_4] : memref<16x1xi32, #tpu.memory_space<vmem>>, vector<16x1xi32>
    %12 = tpu.iota {dimensions = array<i32: 1>} : vector<16x128xi32>
    %13 = vector.broadcast %11 : vector<16x1xi32> to vector<16x128xi32>
    %14 = arith.cmpi eq, %12, %13 : vector<16x128xi32>
    %cst_5 = arith.constant 0.000000e+00 : f32
    %15 = vector.broadcast %cst_5 : f32 to vector<16x128xf32>
    %16 = arith.select %14, %4, %15 : vector<16x128xi1>, vector<16x128xf32>
    %cst_6 = arith.constant dense<0.000000e+00> : vector<16xf32>
    %17 = vector.multi_reduction <add>, %16, %cst_6 [1] : vector<16x128xf32> to vector<16xf32>
    %18 = vector.shape_cast %17 : vector<16xf32> to vector<16x1xf32>
    %19 = arith.subf %8, %18 : vector<16x1xf32>
    %cst_7 = arith.constant 0.899999976 : f32
    %20 = vector.broadcast %cst_7 : f32 to vector<16x1xf32>
    %21 = arith.mulf %20, %19 : vector<16x1xf32>
    %cst_8 = arith.constant 1.280000e+02 : f32
    %22 = vector.broadcast %cst_8 : f32 to vector<16x1xf32>
    %23 = arith.mulf %22, %8 : vector<16x1xf32>
    %24 = arith.subf %23, %10 : vector<16x1xf32>
    %cst_9 = arith.constant 7.812500e-04 : f32
    %25 = vector.broadcast %cst_9 : f32 to vector<16x1xf32>
    %26 = arith.mulf %25, %24 : vector<16x1xf32>
    %27 = arith.addf %21, %26 : vector<16x1xf32>
    %c16_i32 = arith.constant 16 : i32
    %28 = arith.muli %arg0, %c16_i32 : i32
    %29 = tpu.iota {dimensions = array<i32: 0>} : vector<16x1xi32>
    %30 = vector.broadcast %28 : i32 to vector<16x1xi32>
    %31 = arith.addi %30, %29 : vector<16x1xi32>
    %c16_i32_10 = arith.constant 16 : i32
    %32 = vector.broadcast %c16_i32_10 : i32 to vector<16x1xi32>
    %33 = arith.cmpi slt, %31, %32 : vector<16x1xi32>
    %cst_11 = arith.constant 0.000000e+00 : f32
    %34 = vector.broadcast %cst_11 : f32 to vector<16x1xf32>
    %35 = arith.select %33, %27, %34 : vector<16x1xi1>, vector<16x1xf32>
    %36 = vector.shape_cast %35 : vector<16x1xf32> to vector<1x16x1xf32>
    %cst_12 = arith.constant dense<0.000000e+00> : vector<1xf32>
    %37 = vector.multi_reduction <add>, %36, %cst_12 [1, 2] : vector<1x16x1xf32> to vector<1xf32>
    %38 = vector.shape_cast %37 : vector<1xf32> to vector<1x1x1xf32>
    %39 = vector.extract %38[0, 0, 0] : f32 from vector<1x1x1xf32>
    %40 = vector.broadcast %39 : f32 to vector<1x8x128xf32>
    %c0_13 = arith.constant 0 : index
    %c0_14 = arith.constant 0 : index
    %c0_15 = arith.constant 0 : index
    %41 = vector.load %arg3[%c0_13, %c0_14, %c0_15] : memref<1x8x128xf32, #tpu.memory_space<vmem>>, vector<1x8x128xf32>
    tpu.vector_store %arg3[%c0_13, %c0_14, %c0_15], %40 {strides = array<i32>} : memref<1x8x128xf32, #tpu.memory_space<vmem>>, vector<1x8x128xf32>,
    return
  }
  func.func @transform_0(%arg0: i32) -> (i32, i32) {
    %c0_i32 = arith.constant 0 : i32
    %c0_i32_0 = arith.constant 0 : i32
    return %arg0, %c0_i32 : i32, i32
  }
  func.func @transform_1(%arg0: i32) -> (i32, i32) {
    %c0_i32 = arith.constant 0 : i32
    %c0_i32_0 = arith.constant 0 : i32
    return %arg0, %c0_i32 : i32, i32
  }
  func.func @transform_2(%arg0: i32) -> (i32, i32, i32) {
    %c0_i32 = arith.constant 0 : i32
    %c0_i32_0 = arith.constant 0 : i32
    %c0_i32_1 = arith.constant 0 : i32
    return %arg0, %c0_i32, %c0_i32_0 : i32, i32, i32
  }
}

</mosaic_0001>

<bundles_post_ra>
// kernel: tpu_custom_call.1
= control target key start
LH: loop header
LB: loop body
LE: loop exit
PB: predicated region body
PF: predicated region fallthrough
CT: control target
= control target key end

     0   :  { %v144_v2 = vmov 0   ;;  %s185_s0 = inlined_call_operand.vmem [shape: s32[16,1], index: 0, kind: input, shape index: {}]   ;;  %s186_s1 = inlined_call_operand.vmem [shape: f32[16,128], index: 1, kind: input, shape index: {}]   ;;  %s187_s2 = inlined_call_operand.hbm [shape: f32[1,8,128], index: 2, kind: output, shape index: {}]  }
   0x1   :  { %v12_v0 = vld [vmem:[%s186_s1] sm:$0xff]  ;;  %110 = vset.pattern.permute.xlu1 %v144_v2 }
   0x2   :  { %v36_v1 = vld [vmem:[%s185_s0] sm:$0xff]  ;;  %14 = vmax.xlane.f32.xlu0 %v12_v0 }
   0x3   :  { %7 = vsyncpa [#allocation3], 0  ;;  %v13_v3 = vld [vmem:[%s186_s1 + $0x8] sm:$0xff]  ;;  %41 = vperm.xlu1 %110, %v36_v1   ;;  %111 = vset.pattern.permute.xlu0 %v144_v2  ;;  %v38_v12 = vlaneseq  ;;  %vm77_vm2 = vcmask 7168  }
   0x4   :  { %v37_v4 = vld [vmem:[%s185_s0 + $0x8] sm:$0xff]  ;;  %s145_s0 = smov [#allocation2]  }
   0x5   :  { %v39_v15 = vand.u32 127, %v38_v12  ;;  %s98_s1 = sshll.u32 %s145_s0, 4  ;;  %s99_s1 = int_to_ptr.vmem [resolvable:$true] %s98_s1 }
   0x6   :  { %16 = vmax.xlane.f32.xlu0 %v13_v3  ;;  %s120_s18 = scalar_lea.vmem %s99_s1, 128  ;;  %p125_p1 = scmp.lt.s32.totalorder %s99_s1, %s99_s1 }
   0x7   :  { %44 = vperm.xlu1 %110, %v37_v4   ;;  %p121_p0 = scmp.ne.s32.totalorder %s99_s1, %s120_s18  ;;  %p126_p2 = scmp.lt.s32.totalorder %s120_s18, %s120_s18 }
   0x9   :  { %p127_p3 = por %p126_p2, %p125_p1 }
   0xb   :  { %p128_p4 = pnand %p127_p3, %p121_p0 }
  0x82   :  { %v42_v14 = vpop.permute.xlu1 %41 }
  0x83   :  { %vm46_vm0 = vcmp.eq.s32.totalorder %v39_v15, %v42_v14 }
  0x86   :  { %v45_v16 = vpop.permute.xlu1 %44 }
  0x87   :  { %vm47_vm1 = vcmp.eq.s32.totalorder %v39_v15, %v45_v16 }
  0x8f   :  { %v15_v5 = vpop.xlane.xlu0 %14 }
  0x90   :  { %v18_v6 = vsub.f32 %v12_v0, %v15_v5 }
  0x92   :  { %v20_v7 = vmul.f32 1.442695, %v18_v6  ;;  %v48_v17 = vsel %vm46_vm0, %v18_v6, 0.0 }
  0x93   :  { %v17_v8 = vpop.xlane.xlu0 %16 }
  0x94   :  { %112 = vpow2.f32 %v20_v7  ;;  %v19_v9 = vsub.f32 %v13_v3, %v17_v8 }
  0x96   :  { %v22_v10 = vmul.f32 1.442695, %v19_v9  ;;  %v49_v18 = vsel %vm47_vm1, %v19_v9, 0.0 }
  0x98   :  { %114 = vpow2.f32 %v22_v10 }
  0x9e   :  { %v113_v11 = vpop.eup %112 }
  0x9f   :  { %24 = vadd.xlane.f32.xlu0 %v113_v11 }
  0xa2   :  { %v115_v13 = vpop.eup %114 }
  0xa3   :  { %32 = vadd.xlane.f32.xlu0 %v18_v6  ;;  %26 = vadd.xlane.f32.xlu1 %v115_v13 }
  0xa7   :  { %34 = vadd.xlane.f32.xlu0 %v19_v9 }
  0xab   :  { %50 = vadd.xlane.f32.xlu0 %v48_v17 }
  0xaf   :  { %52 = vadd.xlane.f32.xlu0 %v49_v18 }
 0x12c   :  { %v25_v19 = vpop.xlane.xlu0 %24 }
 0x12d   :  { %116 = vlog2.f32 %v25_v19 }
 0x130   :  { %v27_v20 = vpop.xlane.xlu1 %26  ;;  %v33_v21 = vpop.xlane.xlu0 %32 }
 0x131   :  { %118 = vlog2.f32 %v27_v20 }
 0x134   :  { %v35_v22 = vpop.xlane.xlu0 %34 }
 0x137   :  { %v117_v23 = vpop.eup %116 }
 0x138   :  { %v29_v24 = vmul.f32 0.6931472, %v117_v23  ;;  %v51_v25 = vpop.xlane.xlu0 %50 }
 0x13a   :  { %v58_v26 = vmul.f32 128.0, %v29_v24  ;;  %v54_v30 = vsub.f32 %v29_v24, %v51_v25 }
 0x13b   :  { %v119_v27 = vpop.eup %118 }
 0x13c   :  { %v31_v28 = vmul.f32 0.6931472, %v119_v27  ;;  %v60_v29 = vsub.f32 %v58_v26, %v33_v21  ;;  %v53_v31 = vpop.xlane.xlu0 %52  ;;  %v56_v36 = vmul.f32 0.9, %v54_v30 }
 0x13e   :  { %v62_v32 = vmul.f32 0.00078125, %v60_v29  ;;  %v59_v33 = vmul.f32 128.0, %v31_v28  ;;  %v55_v34 = vsub.f32 %v31_v28, %v53_v31 }
 0x140   :  { %v61_v35 = vsub.f32 %v59_v33, %v35_v22  ;;  %v64_v38 = vadd.f32 %v62_v32, %v56_v36  ;;  %v57_v39 = vmul.f32 0.9, %v55_v34 }
 0x142   :  { %v63_v37 = vmul.f32 0.00078125, %v61_v35  ;;  %v78_v41 = vsel %vm77_vm2, %v64_v38, 0.0 }
 0x144   :  { %v65_v40 = vadd.f32 %v63_v37, %v57_v39 }
 0x146   :  { %v79_v42 = vsel %vm77_vm2, %v65_v40, 0.0 }
 0x147   :  { %v80_v43 = vadd.f32 %v79_v42, %v78_v41 }
 0x149   :  { %81 = vadd.xlane.f32.xlu0 %v80_v43 }
 0x1d6   :  { %v82_v44 = vpop.xlane.xlu0 %81 }
 0x1d7   :  { %v83_v45 = vrot.slane %v82_v44, 4 }
 0x1d9   :  { %v84_v46 = vadd.f32 %v83_v45, %v82_v44 }
 0x1db   :  { %v85_v47 = vrot.slane %v84_v46, 2 }
 0x1dd   :  { %v86_v48 = vadd.f32 %v85_v47, %v84_v46 }
 0x1df   :  { %v87_v49 = vrot.slane %v86_v48, 1 }
 0x1e1   :  { %v88_v50 = vadd.f32 %v87_v49, %v86_v48 }
 0x1e3   :  { %106 = vpush %v88_v50 }
 0x214   :  { %s107_s17 = spop %106 }
 0x215   :  { %v90_v51 = vstv %s107_s17 }
 0x216   :  { %91 = vst [vmem:[#allocation2] sm:$0xff] %v90_v51 }
 0x217   :  { %131 = shalt.err (!%p128_p4)
}
 0x218   :  { %s132_s21 = scalar_lea.hbm %s187_s2, 128 }
 0x219   :  { %p133_p5 = scmp.ne.s32.totalorder %s187_s2, %s132_s21  ;;  %p136_p6 = scmp.lt.u32.totalorder %s132_s21, %s187_s2 }
 0x21b   :  { %p138_p7 = pnand %p136_p6, %p133_p5 }
 0x21d   :  { %141 = shalt.err (!%p138_p7)
}
 0x21e   :  { %101 = dma.vmem_to_hbm [thread:$0]  %s99_s1, 128, %s187_s2, [#allocation3]  }
 0x21f   :  { %142 = dma.done.wait [#allocation3], 128  }
 0x220   :  { %143 = vsyncadd [#allocation3], 4294967168 }
 0x221   :  { %105 = vsyncpa [#allocation3], 1 }

</bundles_post_ra>
